<compile_context>
chip_gen: v7x
topology: tpu7x:2x2x1
jax: 0.10.0
libtpu: 0.0.40
codegen_flags: <defaults>
</compile_context>

<pallas_src>
import math
from functools import partial

import numpy as np
import jax
import jax.numpy as jnp
from jax.experimental import pallas as pl
from jax.experimental.pallas import tpu as pltpu


def _capsule_plan(c_out, s, dim_caps):
    """Static plan for the per-element capsule sum-of-squares.

    Per batch, NCHW-flat index f = c*s + j belongs to capsule f // dim_caps.  The
    grouping of lane j within channel row c depends only on rho = c % period, and
    a capsule may straddle into rows c + delta.  Returns (period, blocks) where
    each block is {rho: (delta, M)} with M[j', j] = 1 iff element (c+delta, j')
    is in the same capsule as (c, j).  Within a block every rho has at most one
    delta, so each block's row shift is a (sub-)permutation of channel rows that
    can be folded into the conv weights.
    """
    period = dim_caps // math.gcd(s, dim_caps)
    max_span = (dim_caps + s - 1) // s + 1
    terms = []
    for rho in range(period):
        r = (rho * s) % dim_caps
        g_here = (r + np.arange(s)) // dim_caps
        for delta in range(-max_span, max_span + 1):
            g_other = (r + delta * s + np.arange(s)) // dim_caps
            m = (g_other[:, None] == g_here[None, :]).astype(np.float32)
            if m.any():
                terms.append((rho, delta, m))
    blocks = [{rho: (0, m) for (rho, d, m) in terms if d == 0}]   # identity block
    for (rho, d, m) in terms:
        if d == 0:
            continue
        for blk in blocks[1:]:
            if rho not in blk:
                blk[rho] = (d, m)
                break
        else:
            blocks.append({rho: (d, m)})
    return period, blocks


def _block_matrices(blocks, c_out, s, period, bpb, lpad):
    """Per block: row-shift (c_out, c_out) and lane-grouping (lpad, period*lpad) mats.

    The grouping matrices are block-diagonal over the BPB batches fused into lanes
    (lane = b_local*s + j) and packed along output lanes by rho.
    """
    shift_mats, group_mats = [], []
    for blk in blocks:
        shift = np.zeros((c_out, c_out), np.float32)
        for c in range(c_out):
            rho = c % period
            if rho in blk:
                d = blk[rho][0]
                if 0 <= c + d < c_out:
                    shift[c, c + d] = 1.0
        grp = np.zeros((lpad, period * lpad), np.float32)
        for rho, (_d, m) in blk.items():
            for b in range(bpb):
                grp[b * s:(b + 1) * s,
                    rho * lpad + b * s: rho * lpad + (b + 1) * s] = m
        shift_mats.append(shift)
        group_mats.append(grp)
    return shift_mats, group_mats


@partial(jax.jit, static_argnames=("dim_caps", "kernel_size", "stride", "padding"))
def primary_capsule_forward(x, weight, bias, dim_caps, kernel_size, stride=1, padding=0):
    B, C_in, H, W = x.shape
    C_out = weight.shape[0]
    K = kernel_size
    if padding:
        x = jnp.pad(x, ((0, 0), (0, 0), (padding, padding), (padding, padding)))
    Hp, Wp = H + 2 * padding, W + 2 * padding
    Ho = (Hp - K) // stride + 1
    Wo = (Wp - K) // stride + 1
    S = Ho * Wo
    Kd = C_in * K * K
    assert (C_out * S) % dim_caps == 0
    # Contraction padded to a lane tile; the +1 row folds the conv bias into the GEMM.
    Kp = pl.cdiv(Kd + 1, 128) * 128

    # ---- batch fusion into lanes -------------------------------------------
    BPB = max(1, min(B, 128 // S))          # batches fused per grid step
    G = pl.cdiv(B, BPB)                     # grid steps (>= num cores at real batch sizes)
    B_pad = G * BPB
    Lr = BPB * S                            # real lanes per step
    Lpad = pl.cdiv(Lr, 128) * 128           # lane-dense tile -> unmasked stores

    period, blocks = _capsule_plan(C_out, S, dim_caps)
    n_blocks = len(blocks)
    shift_np, group_np = _block_matrices(blocks, C_out, S, period, BPB, Lpad)

    # ---- im2col (host side; fine at toy sizes) -----------------------------
    # TODO(synk): for production shapes move im2col in-kernel (x kept in HBM via
    # memory_space=pl.ANY, K*K strided loads accumulated into the GEMM) to avoid
    # the ~K^2/stride^2 HBM read inflation (matters most on v5e), and split K /
    # use bf16 weights once resident weights approach v7x's 64 MiB VMEM.
    cols = []
    for i in range(K):
        for j in range(K):
            cols.append(x[:, :, i:i + stride * Ho:stride, j:j + stride * Wo:stride])
    p = jnp.stack(cols, axis=2).reshape(B, Kd, S)       # rows in torch (ci,kh,kw) order
    if B_pad > B:
        p = jnp.concatenate([p, jnp.zeros((B_pad - B, Kd, S), p.dtype)], axis=0)
    # lane = b_local*S + j  (batch fused into lanes)
    p = jnp.transpose(p.reshape(G, BPB, Kd, S), (0, 2, 1, 3)).reshape(G, Kd, Lr)
    p_parts = [p, jnp.ones((G, 1, Lr), p.dtype)]        # bias row
    if Kp > Kd + 1:
        p_parts.append(jnp.zeros((G, Kp - Kd - 1, Lr), p.dtype))
    patches = jnp.concatenate(p_parts, axis=1)
    if Lpad > Lr:
        patches = jnp.concatenate(
            [patches, jnp.zeros((G, Kp, Lpad - Lr), patches.dtype)], axis=2)

    # ---- weights: bias folded in; row-shift companions stacked along rows ---
    w_parts = [weight.reshape(C_out, Kd), bias.reshape(C_out, 1)]
    if Kp > Kd + 1:
        w_parts.append(jnp.zeros((C_out, Kp - Kd - 1), weight.dtype))
    w_full = jnp.concatenate(w_parts, axis=1)                       # (C_out, Kp)
    w_stack = jnp.concatenate([jnp.asarray(sm) @ w_full for sm in shift_np], axis=0)
    group_mats = [jnp.asarray(g) for g in group_np]

    def kernel(*refs):
        w_ref, p_ref = refs[0], refs[1]
        g_refs = refs[2:2 + n_blocks]
        o_ref = refs[-1]

        # Conv2d as one GEMM.  Row block k holds the conv output with channel rows
        # shifted by that block's capsule-straddle delta (shift folded into the
        # weights on the host), so no in-kernel roll/shift/permute is needed.
        conv_big = jnp.dot(w_ref[...], p_ref[...], preferred_element_type=jnp.float32)
        q_big = conv_big * conv_big
        conv = conv_big[:C_out, :]                       # identity (delta = 0) block

        # Per-element capsule sum-of-squares: one grouping matmul per shift block,
        # with the per-rho matrices packed along output lanes (block-diag over the
        # fused batches, so batches never mix).
        gs_wide = jnp.dot(q_big[:C_out, :], g_refs[0][...],
                          preferred_element_type=jnp.float32)
        for k in range(1, n_blocks):
            gs_wide = gs_wide + jnp.dot(q_big[k * C_out:(k + 1) * C_out, :],
                                        g_refs[k][...],
                                        preferred_element_type=jnp.float32)

        if period == 1:
            gs = gs_wide
        else:
            # hoisted once; tile-aligned lane slices + short select chain
            rho_row = jax.lax.broadcasted_iota(jnp.int32, (C_out, Lpad), 0) % period
            gs = gs_wide[:, :Lpad]
            for rho in range(1, period):
                gs = jnp.where(rho_row == rho,
                               gs_wide[:, rho * Lpad:(rho + 1) * Lpad], gs)

        # squash: scale = ||v||^2 / (1 + ||v||^2) / (||v|| + 1e-8), one EUP reciprocal.
        norm = jnp.sqrt(gs)
        scale = gs * pl.reciprocal((1.0 + gs) * (norm + 1e-8), approx=False)
        o_ref[...] = (conv * scale).astype(o_ref.dtype)

    flops = int(G * (2 * n_blocks * C_out * Kp * Lpad
                     + 2 * n_blocks * C_out * Lpad * period * Lpad
                     + 10 * C_out * Lpad))
    transcendentals = int(G * 2 * C_out * Lpad)
    bytes_accessed = int(4 * (n_blocks * C_out * Kp + G * Kp * Lpad
                              + n_blocks * Lpad * period * Lpad + G * C_out * Lpad))

    in_specs = [pl.BlockSpec((n_blocks * C_out, Kp), lambda g: (0, 0)),   # stacked weights (resident)
                pl.BlockSpec((None, Kp, Lpad), lambda g: (g, 0, 0))]      # per-step fused patches
    in_specs += [pl.BlockSpec((Lpad, period * Lpad), lambda g: (0, 0))
                 for _ in range(n_blocks)]                                # grouping mats (resident)

    out = pl.pallas_call(
        kernel,
        out_shape=jax.ShapeDtypeStruct((G, C_out, Lpad), jnp.float32),
        grid=(G,),
        in_specs=in_specs,
        out_specs=pl.BlockSpec((None, C_out, Lpad), lambda g: (g, 0, 0)),
        compiler_params=pltpu.CompilerParams(dimension_semantics=("parallel",)),
        cost_estimate=pl.CostEstimate(flops=flops, transcendentals=transcendentals,
                                      bytes_accessed=bytes_accessed),
    )(w_stack, patches, *group_mats)

    # Undo lane fusion; PyTorch .view(B, -1, dim_caps) on the NCHW-flat rows.
    out = out[:, :, :Lr].reshape(G, C_out, BPB, S)
    out = jnp.transpose(out, (0, 2, 1, 3)).reshape(B_pad, C_out * S)[:B]
    return out.reshape(B, (C_out * S) // dim_caps, dim_caps)


def _reference(x, weight, bias, dim_caps, stride, padding):
    out = jax.lax.conv_general_dilated(
        x, weight, window_strides=(stride, stride),
        padding=[(padding, padding), (padding, padding)],
        dimension_numbers=('NCHW', 'OIHW', 'NCHW'))
    out = out + bias.reshape(1, -1, 1, 1)
    caps = out.reshape(x.shape[0], -1, dim_caps)
    sq = jnp.sum(caps * caps, axis=-1, keepdims=True)
    norm = jnp.sqrt(sq)
    return (sq / (1.0 + sq) / (norm + 1e-8)) * caps


if __name__ == "__main__":
    # PrimaryCapsule(in_channels=4, out_channels=16, dim_caps=8, kernel_size=5, stride=2)
    B, C_in, H, W = 2, 4, 16, 16
    C_out, dim_caps, K, stride, padding = 16, 8, 5, 2, 0

    key = jax.random.PRNGKey(0)
    kx, kw, kb = jax.random.split(key, 3)
    x = jax.random.normal(kx, (B, C_in, H, W), dtype=jnp.float32)
    weight = jax.random.normal(kw, (C_out, C_in, K, K), dtype=jnp.float32) * 0.1
    bias = jax.random.normal(kb, (C_out,), dtype=jnp.float32) * 0.1

    out = primary_capsule_forward(x, weight, bias, dim_caps=dim_caps,
                                  kernel_size=K, stride=stride, padding=padding)
    out = jax.block_until_ready(out)

    ref = _reference(x, weight, bias, dim_caps, stride, padding)
    assert out.shape == ref.shape, (out.shape, ref.shape)
    assert jnp.allclose(out, ref, rtol=1e-4, atol=1e-4), float(jnp.max(jnp.abs(out - ref)))

    print("KERNEL_OK")
</pallas_src>

<mosaic_0001>
module attributes {stable_mosaic.version = 11 : i64} {
  func.func @kernel(%arg0: i32, %arg1: memref<32x128xf32, #tpu.memory_space<vmem>>, %arg2: memref<1x128x128xf32, #tpu.memory_space<vmem>>, %arg3: memref<128x256xf32, #tpu.memory_space<vmem>>, %arg4: memref<128x256xf32, #tpu.memory_space<vmem>>, %arg5: memref<1x16x128xf32, #tpu.memory_space<vmem>>) attributes {dimension_semantics = [#tpu.dimension_semantics<parallel>], iteration_bounds = array<i64: 1>, scalar_prefetch = 0 : i64, scratch_operands = 0 : i64, tpu.core_type = #tpu.core_type<tc>, window_params = [{pipeline_mode = #tpu.pipeline_mode<synchronous>, transform_indices = @transform_0, window_bounds = array<i64: 32, 128>}, {transform_indices = @transform_1, window_bounds = array<i64: 1, 128, 128>}, {pipeline_mode = #tpu.pipeline_mode<synchronous>, transform_indices = @transform_2, window_bounds = array<i64: 128, 256>}, {pipeline_mode = #tpu.pipeline_mode<synchronous>, transform_indices = @transform_3, window_bounds = array<i64: 128, 256>}, {transform_indices = @transform_4, window_bounds = array<i64: 1, 16, 128>}]} {
    %c0 = arith.constant 0 : index
    %c0_0 = arith.constant 0 : index
    %0 = vector.load %arg1[%c0, %c0_0] : memref<32x128xf32, #tpu.memory_space<vmem>>, vector<32x128xf32>
    %c0_1 = arith.constant 0 : index
    %c0_2 = arith.constant 0 : index
    %c0_3 = arith.constant 0 : index
    %1 = vector.load %arg2[%c0_1, %c0_2, %c0_3] : memref<1x128x128xf32, #tpu.memory_space<vmem>>, vector<1x128x128xf32>
    %2 = vector.shape_cast %1 : vector<1x128x128xf32> to vector<128x128xf32>
    %cst = arith.constant dense<0.000000e+00> : vector<32x128xf32>
    %3 = tpu.matmul %0, %2, %cst {dimension_numbers = #tpu.dot_dimension_numbers<[1], [0], [0], [1], [0, 0, 1, 1], [], []>} : vector<32x128xf32>, vector<128x128xf32>, vector<32x128xf32> -> vector<32x128xf32>
    %4 = arith.mulf %3, %3 : vector<32x128xf32>
    %5 = vector.extract_strided_slice %3 {offsets = [0, 0], sizes = [16, 128], strides = [1, 1]} : vector<32x128xf32> to vector<16x128xf32>
    %6 = vector.extract_strided_slice %4 {offsets = [0, 0], sizes = [16, 128], strides = [1, 1]} : vector<32x128xf32> to vector<16x128xf32>
    %c0_4 = arith.constant 0 : index
    %c0_5 = arith.constant 0 : index
    %7 = vector.load %arg3[%c0_4, %c0_5] : memref<128x256xf32, #tpu.memory_space<vmem>>, vector<128x256xf32>
    %cst_6 = arith.constant dense<0.000000e+00> : vector<16x256xf32>
    %8 = tpu.matmul %6, %7, %cst_6 {dimension_numbers = #tpu.dot_dimension_numbers<[1], [0], [0], [1], [0, 0, 1, 1], [], []>} : vector<16x128xf32>, vector<128x256xf32>, vector<16x256xf32> -> vector<16x256xf32>
    %9 = vector.extract_strided_slice %4 {offsets = [16, 0], sizes = [16, 128], strides = [1, 1]} : vector<32x128xf32> to vector<16x128xf32>
    %c0_7 = arith.constant 0 : index
    %c0_8 = arith.constant 0 : index
    %10 = vector.load %arg4[%c0_7, %c0_8] : memref<128x256xf32, #tpu.memory_space<vmem>>, vector<128x256xf32>
    %cst_9 = arith.constant dense<0.000000e+00> : vector<16x256xf32>
    %11 = tpu.matmul %9, %10, %cst_9 {dimension_numbers = #tpu.dot_dimension_numbers<[1], [0], [0], [1], [0, 0, 1, 1], [], []>} : vector<16x128xf32>, vector<128x256xf32>, vector<16x256xf32> -> vector<16x256xf32>
    %12 = arith.addf %8, %11 : vector<16x256xf32>
    %13 = tpu.iota {dimensions = array<i32: 0>} : vector<16x128xi32>
    %c2_i32 = arith.constant 2 : i32
    %c0_i32 = arith.constant 0 : i32
    %14 = arith.cmpi eq, %c2_i32, %c0_i32 : i32
    %c1_i32 = arith.constant 1 : i32
    %15 = arith.select %14, %c1_i32, %c2_i32 : i32
    %16 = vector.broadcast %15 : i32 to vector<16x128xi32>
    %17 = arith.remsi %13, %16 : vector<16x128xi32>
    %c0_i32_10 = arith.constant 0 : i32
    %18 = vector.broadcast %c0_i32_10 : i32 to vector<16x128xi32>
    %19 = arith.cmpi ne, %17, %18 : vector<16x128xi32>
    %c0_i32_11 = arith.constant 0 : i32
    %20 = vector.broadcast %c0_i32_11 : i32 to vector<16x128xi32>
    %21 = arith.cmpi slt, %17, %20 : vector<16x128xi32>
    %c0_i32_12 = arith.constant 0 : i32
    %22 = arith.cmpi slt, %15, %c0_i32_12 : i32
    %23 = vector.broadcast %22 : i1 to vector<16x128xi1>
    %24 = vector.broadcast %23 : vector<16x128xi1> to vector<16x128xi1>
    %25 = arith.xori %21, %24 : vector<16x128xi1>
    %26 = arith.andi %25, %19 : vector<16x128xi1>
    %27 = vector.broadcast %15 : i32 to vector<16x128xi32>
    %28 = arith.addi %17, %27 : vector<16x128xi32>
    %29 = arith.select %26, %28, %17 : vector<16x128xi1>, vector<16x128xi32>
    %30 = vector.extract_strided_slice %12 {offsets = [0, 0], sizes = [16, 128], strides = [1, 1]} : vector<16x256xf32> to vector<16x128xf32>
    %c1_i32_13 = arith.constant 1 : i32
    %31 = vector.broadcast %c1_i32_13 : i32 to vector<16x128xi32>
    %32 = arith.cmpi eq, %29, %31 : vector<16x128xi32>
    %33 = vector.extract_strided_slice %12 {offsets = [0, 128], sizes = [16, 128], strides = [1, 1]} : vector<16x256xf32> to vector<16x128xf32>
    %34 = arith.select %32, %33, %30 : vector<16x128xi1>, vector<16x128xf32>
    %35 = math.sqrt %34 : vector<16x128xf32>
    %cst_14 = arith.constant 1.000000e+00 : f32
    %36 = vector.broadcast %cst_14 : f32 to vector<16x128xf32>
    %37 = arith.addf %36, %34 : vector<16x128xf32>
    %cst_15 = arith.constant 9.99999993E-9 : f32
    %38 = vector.broadcast %cst_15 : f32 to vector<16x128xf32>
    %39 = arith.addf %35, %38 : vector<16x128xf32>
    %40 = arith.mulf %37, %39 : vector<16x128xf32>
    %41 = tpu.reciprocal %40 : vector<16x128xf32> -> vector<16x128xf32>
    %42 = arith.mulf %34, %41 : vector<16x128xf32>
    %43 = arith.mulf %5, %42 : vector<16x128xf32>
    %c0_16 = arith.constant 0 : index
    %c0_17 = arith.constant 0 : index
    %c0_18 = arith.constant 0 : index
    %44 = vector.load %arg5[%c0_16, %c0_17, %c0_18] : memref<1x16x128xf32, #tpu.memory_space<vmem>>, vector<1x16x128xf32>
    %45 = vector.shape_cast %44 : vector<1x16x128xf32> to vector<16x128xf32>
    %46 = vector.shape_cast %43 : vector<16x128xf32> to vector<1x16x128xf32>
    tpu.vector_store %arg5[%c0_16, %c0_17, %c0_18], %46 {strides = array<i32>} : memref<1x16x128xf32, #tpu.memory_space<vmem>>, vector<1x16x128xf32>,
    return
  }
  func.func @transform_0(%arg0: i32) -> (i32, i32) {
    %c0_i32 = arith.constant 0 : i32
    %c0_i32_0 = arith.constant 0 : i32
    %c0_i32_1 = arith.constant 0 : i32
    return %c0_i32, %c0_i32_0 : i32, i32
  }
  func.func @transform_1(%arg0: i32) -> (i32, i32, i32) {
    %c0_i32 = arith.constant 0 : i32
    %c0_i32_0 = arith.constant 0 : i32
    %c0_i32_1 = arith.constant 0 : i32
    return %arg0, %c0_i32, %c0_i32_0 : i32, i32, i32
  }
  func.func @transform_2(%arg0: i32) -> (i32, i32) {
    %c0_i32 = arith.constant 0 : i32
    %c0_i32_0 = arith.constant 0 : i32
    %c0_i32_1 = arith.constant 0 : i32
    return %c0_i32, %c0_i32_0 : i32, i32
  }
  func.func @transform_3(%arg0: i32) -> (i32, i32) {
    %c0_i32 = arith.constant 0 : i32
    %c0_i32_0 = arith.constant 0 : i32
    %c0_i32_1 = arith.constant 0 : i32
    return %c0_i32, %c0_i32_0 : i32, i32
  }
  func.func @transform_4(%arg0: i32) -> (i32, i32, i32) {
    %c0_i32 = arith.constant 0 : i32
    %c0_i32_0 = arith.constant 0 : i32
    %c0_i32_1 = arith.constant 0 : i32
    return %arg0, %c0_i32, %c0_i32_0 : i32, i32, i32
  }
}

</mosaic_0001>

<bundles_post_ra>
// kernel: primary_capsule_forward.1
= control target key start
LH: loop header
LB: loop body
LE: loop exit
PB: predicated region body
PF: predicated region fallthrough
CT: control target
= control target key end

     0   :  { %s915_s1 = inlined_call_operand.vmem [shape: f32[1,128,128], index: 1, kind: input, shape index: {}]   ;;  %s916_s0 = inlined_call_operand.vmem [shape: f32[32,128], index: 0, kind: input, shape index: {}]   ;;  %s917_s3 = inlined_call_operand.vmem [shape: f32[128,256], index: 3, kind: input, shape index: {}]   ;;  %s918_s2 = inlined_call_operand.vmem [shape: f32[128,256], index: 2, kind: input, shape index: {}]   ;;  %s919_s4 = inlined_call_operand.vmem [shape: f32[1,16,128], index: 4, kind: output, shape index: {}]  }
   0x1   :  { %v21_v0 = vld [vmem:[%s915_s1] sm:$0xff]  ;;  %v22_v1 = vld [vmem:[%s915_s1 + $0x8] sm:$0xff]  ;;  %v23_v2 = vld [vmem:[%s915_s1 + $0x10] sm:$0xff] }
   0x2   :  { %v465_v3 = vpack.c.bf16 %v22_v1, %v21_v0  ;;  %v24_v4 = vld [vmem:[%s915_s1 + $0x18] sm:$0xff]  ;;  %v25_v6 = vld [vmem:[%s915_s1 + $0x20] sm:$0xff]  ;;  %v26_v7 = vld [vmem:[%s915_s1 + $0x28] sm:$0xff] }
   0x3   :  { %v469_v5 = vpack.c.bf16 %v24_v4, %v23_v2  ;;  %v473_v8 = vpack.c.bf16 %v26_v7, %v25_v6  ;;  %v17_v9 = vld [vmem:[%s916_s0] sm:$0xff]  ;;  %v27_v10 = vld [vmem:[%s915_s1 + $0x30] sm:$0xff]  ;;  %v28_v11 = vld [vmem:[%s915_s1 + $0x38] sm:$0xff] }
   0x4   :  { %466 = vmatprep.subr.bf16.mxu0 %v465_v3  ;;  %459 = vmatprep.mubr.f32.mxu0 %v17_v9  ;;  %v159_v12 = vld [vmem:[%s917_s3 + $0x8] sm:$0xff]  ;;  %v161_v13 = vld [vmem:[%s917_s3 + $0x18] sm:$0xff]  ;;  %v158_v14 = vld [vmem:[%s917_s3] sm:$0xff]  ;;  %v477_v15 = vpack.c.bf16 %v28_v11, %v27_v10 }
   0x5   :  { %468 = vmatpush3.bf16.msra.mxu0 %v465_v3  ;;  %v497_v16 = vpack.c.bf16 %v161_v13, %v159_v12  ;;  %v160_v17 = vld [vmem:[%s917_s3 + $0x10] sm:$0xff]  ;;  %v29_v18 = vld [vmem:[%s915_s1 + $0x40] sm:$0xff]  ;;  %v30_v19 = vld [vmem:[%s915_s1 + $0x48] sm:$0xff] }
   0x6   :  { %470 = vmatprep.subr.bf16.mxu0 %v469_v5  ;;  %v499_v20 = vpack.c.bf16 %v160_v17, %v158_v14  ;;  %v163_v21 = vld [vmem:[%s917_s3 + $0x28] sm:$0xff]  ;;  %v165_v22 = vld [vmem:[%s917_s3 + $0x38] sm:$0xff]  ;;  %v162_v23 = vld [vmem:[%s917_s3 + $0x20] sm:$0xff]  ;;  %v481_v27 = vpack.c.bf16 %v30_v19, %v29_v18 }
   0x7   :  { %498 = vmatprep.subr.bf16.mxu1 %v497_v16  ;;  %v164_v24 = vld [vmem:[%s917_s3 + $0x30] sm:$0xff]  ;;  %v501_v25 = vpack.c.bf16 %v165_v22, %v163_v21  ;;  %v167_v29 = vld [vmem:[%s917_s3 + $0x48] sm:$0xff]  ;;  %v169_v30 = vld [vmem:[%s917_s3 + $0x58] sm:$0xff] }
   0x8   :  { %500 = vmatpush1.bf16.msra.mxu1 %v499_v20  ;;  %v503_v26 = vpack.c.bf16 %v164_v24, %v162_v23  ;;  %v31_v28 = vld [vmem:[%s915_s1 + $0x50] sm:$0xff]  ;;  %v32_v31 = vld [vmem:[%s915_s1 + $0x58] sm:$0xff]  ;;  %v505_v32 = vpack.c.bf16 %v169_v30, %v167_v29  ;;  %v166_v33 = vld [vmem:[%s917_s3 + $0x40] sm:$0xff] }
   0x9   :  { %472 = vmatpush3.bf16.msra.mxu0 %v469_v5  ;;  %502 = vmatprep.subr.bf16.mxu1 %v501_v25  ;;  %v168_v34 = vld [vmem:[%s917_s3 + $0x50] sm:$0xff]  ;;  %v171_v36 = vld [vmem:[%s917_s3 + $0x68] sm:$0xff]  ;;  %v173_v37 = vld [vmem:[%s917_s3 + $0x78] sm:$0xff]  ;;  %v485_v38 = vpack.c.bf16 %v32_v31, %v31_v28 }
   0xa   :  { %474 = vmatprep.subr.bf16.mxu0 %v473_v8  ;;  %v507_v35 = vpack.c.bf16 %v168_v34, %v166_v33  ;;  %v509_v39 = vpack.c.bf16 %v173_v37, %v171_v36  ;;  %v170_v40 = vld [vmem:[%s917_s3 + $0x60] sm:$0xff]  ;;  %v172_v41 = vld [vmem:[%s917_s3 + $0x70] sm:$0xff]  ;;  %v34_v43 = vld [vmem:[%s915_s1 + $0x68] sm:$0xff] }
   0xb   :  { %v33_v42 = vld [vmem:[%s915_s1 + $0x60] sm:$0xff]  ;;  %v175_v44 = vld [vmem:[%s917_s3 + $0x88] sm:$0xff]  ;;  %v177_v45 = vld [vmem:[%s917_s3 + $0x98] sm:$0xff]  ;;  %v511_v46 = vpack.c.bf16 %v172_v41, %v170_v40 }
   0xc   :  { %504 = vmatpush1.bf16.msra.mxu1 %v503_v26  ;;  %v489_v47 = vpack.c.bf16 %v34_v43, %v33_v42  ;;  %v35_v48 = vld [vmem:[%s915_s1 + $0x70] sm:$0xff]  ;;  %v513_v49 = vpack.c.bf16 %v177_v45, %v175_v44  ;;  %v174_v50 = vld [vmem:[%s917_s3 + $0x80] sm:$0xff]  ;;  %v36_v52 = vld [vmem:[%s915_s1 + $0x78] sm:$0xff] }
   0xd   :  { %476 = vmatpush3.bf16.msra.mxu0 %v473_v8  ;;  %506 = vmatprep.subr.bf16.mxu1 %v505_v32  ;;  %v176_v51 = vld [vmem:[%s917_s3 + $0x90] sm:$0xff]  ;;  %v179_v53 = vld [vmem:[%s917_s3 + $0xa8] sm:$0xff]  ;;  %v181_v54 = vld [vmem:[%s917_s3 + $0xb8] sm:$0xff]  ;;  %v493_v56 = vpack.c.bf16 %v36_v52, %v35_v48 }
   0xe   :  { %478 = vmatprep.subr.bf16.mxu0 %v477_v15  ;;  %v515_v55 = vpack.c.bf16 %v176_v51, %v174_v50  ;;  %v127_v57 = vld [vmem:[%s918_s2 + $0x8] sm:$0xff]  ;;  %v517_v58 = vpack.c.bf16 %v181_v54, %v179_v53  ;;  %v178_v59 = vld [vmem:[%s917_s3 + $0xa0] sm:$0xff]  ;;  %v180_v60 = vld [vmem:[%s917_s3 + $0xb0] sm:$0xff] }
   0xf   :  { %v129_v61 = vld [vmem:[%s918_s2 + $0x18] sm:$0xff]  ;;  %v183_v62 = vld [vmem:[%s917_s3 + $0xc8] sm:$0xff]  ;;  %v519_v0 = vpack.c.bf16 %v180_v60, %v178_v59  ;;  %v126_v2 = vld [vmem:[%s918_s2] sm:$0xff]  ;;  %v590_v60 = vmov 0.0  }
  0x10   :  { %508 = vmatpush1.bf16.msra.mxu1 %v507_v35  ;;  %v185_v63 = vld [vmem:[%s917_s3 + $0xd8] sm:$0xff]  ;;  %v751_v1 = vpack.c.bf16 %v129_v61, %v127_v57  ;;  %v128_v3 = vld [vmem:[%s918_s2 + $0x10] sm:$0xff]  ;;  %v131_v5 = vld [vmem:[%s918_s2 + $0x28] sm:$0xff]  ;;  %254 = vmatprep.mubr.f32.mxu1 %v590_v60 }
  0x11   :  { %480 = vmatpush3.bf16.msra.mxu0 %v477_v15  ;;  %510 = vmatprep.subr.bf16.mxu1 %v509_v39  ;;  %v521_v4 = vpack.c.bf16 %v185_v63, %v183_v62  ;;  %v133_v6 = vld [vmem:[%s918_s2 + $0x38] sm:$0xff]  ;;  %v18_v7 = vld [vmem:[%s916_s0 + $0x8] sm:$0xff]  ;;  %v768_v8 = vpack.c.bf16 %v128_v3, %v126_v2  ;;  %v19_v9 = vld [vmem:[%s916_s0 + $0x10] sm:$0xff] }
  0x12   :  { %482 = vmatprep.subr.bf16.mxu0 %v481_v27  ;;  %v774_v10 = vpack.c.bf16 %v133_v6, %v131_v5  ;;  %v130_v11 = vld [vmem:[%s918_s2 + $0x20] sm:$0xff]  ;;  %v132_v12 = vld [vmem:[%s918_s2 + $0x30] sm:$0xff]  ;;  %v135_v13 = vld [vmem:[%s918_s2 + $0x48] sm:$0xff]  ;;  %v344_v5 = vlaneseq }
  0x13   :  { %v137_v14 = vld [vmem:[%s918_s2 + $0x58] sm:$0xff]  ;;  %v792_v16 = vpack.c.bf16 %v132_v12, %v130_v11  ;;  %v134_v18 = vld [vmem:[%s918_s2 + $0x40] sm:$0xff]  ;;  %v136_v19 = vld [vmem:[%s918_s2 + $0x50] sm:$0xff] }
  0x14   :  { %512 = vmatpush1.bf16.msra.mxu1 %v511_v46  ;;  %v20_v15 = vld [vmem:[%s916_s0 + $0x18] sm:$0xff]  ;;  %v795_v17 = vpack.c.bf16 %v137_v14, %v135_v13  ;;  %v139_v20 = vld [vmem:[%s918_s2 + $0x68] sm:$0xff]  ;;  %v810_v22 = vpack.c.bf16 %v136_v19, %v134_v18  ;;  %v138_v24 = vld [vmem:[%s918_s2 + $0x60] sm:$0xff]  ;;  %v345_v6 = vshrl.u32 %v344_v5, 7 }
  0x15   :  { %484 = vmatpush3.bf16.msra.mxu0 %v481_v27  ;;  %514 = vmatprep.subr.bf16.mxu1 %v513_v49  ;;  %v141_v21 = vld [vmem:[%s918_s2 + $0x78] sm:$0xff]  ;;  %v140_v25 = vld [vmem:[%s918_s2 + $0x70] sm:$0xff]  ;;  %v143_v26 = vld [vmem:[%s918_s2 + $0x88] sm:$0xff] }
  0x16   :  { %486 = vmatprep.subr.bf16.mxu0 %v485_v38  ;;  %v813_v23 = vpack.c.bf16 %v141_v21, %v139_v20  ;;  %v145_v27 = vld [vmem:[%s918_s2 + $0x98] sm:$0xff]  ;;  %v828_v28 = vpack.c.bf16 %v140_v25, %v138_v24  ;;  %v142_v30 = vld [vmem:[%s918_s2 + $0x80] sm:$0xff]  ;;  %v144_v31 = vld [vmem:[%s918_s2 + $0x90] sm:$0xff] }
  0x17   :  { %v831_v29 = vpack.c.bf16 %v145_v27, %v143_v26  ;;  %v147_v32 = vld [vmem:[%s918_s2 + $0xa8] sm:$0xff]  ;;  %v149_v33 = vld [vmem:[%s918_s2 + $0xb8] sm:$0xff]  ;;  %v547_v34 = vpack.c.bf16 %v144_v31, %v142_v30  ;;  %v146_v36 = vld [vmem:[%s918_s2 + $0xa0] sm:$0xff] }
  0x18   :  { %516 = vmatpush1.bf16.msra.mxu1 %v515_v55  ;;  %v549_v35 = vpack.c.bf16 %v149_v33, %v147_v32  ;;  %v148_v37 = vld [vmem:[%s918_s2 + $0xb0] sm:$0xff]  ;;  %v153_v39 = vld [vmem:[%s918_s2 + $0xd8] sm:$0xff]  ;;  %v150_v42 = vld [vmem:[%s918_s2 + $0xc0] sm:$0xff] }
  0x19   :  { %488 = vmatpush3.bf16.msra.mxu0 %v485_v38  ;;  %518 = vmatprep.subr.bf16.mxu1 %v517_v58  ;;  %v151_v38 = vld [vmem:[%s918_s2 + $0xc8] sm:$0xff]  ;;  %v551_v40 = vpack.c.bf16 %v148_v37, %v146_v36  ;;  %v152_v43 = vld [vmem:[%s918_s2 + $0xd0] sm:$0xff]  ;;  %v182_v45 = vld [vmem:[%s917_s3 + $0xc0] sm:$0xff] }
  0x1a   :  { %490 = vmatprep.subr.bf16.mxu0 %v489_v47  ;;  %v553_v41 = vpack.c.bf16 %v153_v39, %v151_v38  ;;  %v555_v44 = vpack.c.bf16 %v152_v43, %v150_v42  ;;  %v184_v46 = vld [vmem:[%s917_s3 + $0xd0] sm:$0xff]  ;;  %v157_v49 = vld [vmem:[%s918_s2 + $0xf8] sm:$0xff]  ;;  %v154_v50 = vld [vmem:[%s918_s2 + $0xe0] sm:$0xff] }
  0x1b   :  { %v523_v48 = vpack.c.bf16 %v184_v46, %v182_v45  ;;  %v156_v51 = vld [vmem:[%s918_s2 + $0xf0] sm:$0xff]  ;;  %v187_v54 = vld [vmem:[%s917_s3 + $0xe8] sm:$0xff]  ;;  %v189_v55 = vld [vmem:[%s917_s3 + $0xf8] sm:$0xff] }
  0x1c   :  { %520 = vmatpush1.bf16.msra.mxu1 %v519_v0  ;;  %v559_v53 = vpack.c.bf16 %v156_v51, %v154_v50  ;;  %v186_v57 = vld [vmem:[%s917_s3 + $0xe0] sm:$0xff]  ;;  %v188_v58 = vld [vmem:[%s917_s3 + $0xf0] sm:$0xff] }
  0x1d   :  { %492 = vmatpush3.bf16.msra.mxu0 %v489_v47  ;;  %522 = vmatprep.subr.bf16.mxu1 %v521_v4  ;;  %v155_v47 = vld [vmem:[%s918_s2 + $0xe8] sm:$0xff]  ;;  %v527_v59 = vpack.c.bf16 %v188_v58, %v186_v57 }
  0x1e   :  { %494 = vmatprep.subr.bf16.mxu0 %v493_v56  ;;  %v557_v52 = vpack.c.bf16 %v157_v49, %v155_v47 }
  0x20   :  { %524 = vmatpush1.bf16.msra.mxu1 %v523_v48 }
  0x21   :  { %496 = vmatpush3.bf16.msra.mxu0 %v493_v56  ;;  %v525_v56 = vpack.c.bf16 %v189_v55, %v187_v54 }
  0x22   :  { %530 = vmatprep.subr.bf16.mxu0 %v751_v1 }
  0x23   :  { %526 = vmatprep.subr.bf16.mxu1 %v525_v56 }
  0x24   :  { %460 = vmatmul.mubr.f32.vlgmr.msra.gmra.mrb[0].mxu0 %v18_v7  ;;  %528 = vmatpush1.bf16.msra.mxu1 %v527_v59 }
  0x25   :  { %462 = vmatprep.mubr.f32.mxu0 %v19_v9  ;;  %532 = vmatpush1.bf16.msra.mxu0 %v768_v8  ;;  %v351_v9 = vand.u32 1, %v345_v6 }
  0x26   :  { %534 = vmatprep.subr.bf16.mxu0 %v774_v10  ;;  %561 = vmatprep.subr.bf16.mxu1 %v751_v1 }
  0x27   :  { %vm371_vm0 = vcmp.eq.s32.totalorder %v351_v9, 1 }
  0x28   :  { %463 = vmatmul.mubr.f32.gmra.mrb[2].mxu0 %v20_v15 }
  0x29   :  { %536 = vmatpush1.bf16.msra.mxu0 %v792_v16  ;;  %331 = vmatprep.mubr.f32.mxu0 %v590_v60 }
  0x2a   :  { %538 = vmatprep.subr.bf16.mxu0 %v795_v17 }
  0x2d   :  { %540 = vmatpush1.bf16.msra.mxu0 %v810_v22 }
  0x2e   :  { %542 = vmatprep.subr.bf16.mxu0 %v813_v23 }
  0x31   :  { %544 = vmatpush1.bf16.msra.mxu0 %v828_v28 }
  0x32   :  { %546 = vmatprep.subr.bf16.mxu0 %v831_v29 }
  0x35   :  { %548 = vmatpush1.bf16.msra.mxu0 %v547_v34 }
  0x36   :  { %550 = vmatprep.subr.bf16.mxu0 %v549_v35 }
  0x39   :  { %552 = vmatpush1.bf16.msra.mxu0 %v551_v40 }
  0x3a   :  { %554 = vmatprep.subr.bf16.mxu0 %v553_v41 }
  0x3d   :  { %556 = vmatpush1.bf16.msra.mxu0 %v555_v44 }
  0x3e   :  { %558 = vmatprep.subr.bf16.mxu0 %v557_v52 }
  0x41   :  { %560 = vmatpush1.bf16.msra.mxu0 %v559_v53 }
  0xf7   :  { %v896_v61 = vpop.f32.mrb[0].mxu0 }
  0xf8   :  { %v103_v62 = vpop.f32.mrb[1].mxu0  ;;  %v123_v1 = vmul.f32 %v896_v61, %v896_v61 }
  0xf9   :  { %v122_v63 = vmul.f32 %v103_v62, %v103_v62 }
  0xfb   :  { %v464_v0 = vpop.f32.mrb[2].mxu0  ;;  %332 = vmatmul.mubr.f32.vlgmr.msra.gmra.mrb[4].mxu0 %v122_v63 }
  0xfc   :  { %v113_v2 = vpop.f32.mrb[3].mxu0  ;;  %v125_v4 = vmul.f32 %v464_v0, %v464_v0 }
  0xfd   :  { %v124_v3 = vmul.f32 %v113_v2, %v113_v2 }
  0xff   :  { %255 = vmatmul.mubr.f32.vlgmr.msra.gmra.mrb[0].mxu1 %v124_v3 }
 0x100   :  { %569 = vmatpush1.bf16.msra.mxu1 %v768_v8  ;;  %260 = vmatprep.mubr.f32.mxu1 %v590_v60 }
 0x101   :  { %562 = vmatprep.subr.bf16.mxu1 %v774_v10 }
 0x103   :  { %261 = vmatmul.mubr.f32.gmra.mrb[2].mxu1 %v125_v4 }
 0x104   :  { %570 = vmatpush1.bf16.msra.mxu1 %v792_v16  ;;  %337 = vmatprep.mubr.f32.mxu1 %v590_v60 }
 0x105   :  { %563 = vmatprep.subr.bf16.mxu1 %v795_v17 }
 0x108   :  { %571 = vmatpush1.bf16.msra.mxu1 %v810_v22 }
 0x109   :  { %564 = vmatprep.subr.bf16.mxu1 %v813_v23  ;;  %v346_v23 = vadd.s32 8, %v345_v6 }
 0x10b   :  { %v358_v24 = vand.u32 1, %v346_v23 }
 0x10c   :  { %572 = vmatpush1.bf16.msra.mxu1 %v828_v28 }
 0x10d   :  { %565 = vmatprep.subr.bf16.mxu1 %v831_v29  ;;  %vm372_vm3 = vcmp.eq.s32.totalorder %v358_v24, 1 }
 0x110   :  { %573 = vmatpush1.bf16.msra.mxu1 %v547_v34 }
 0x111   :  { %566 = vmatprep.subr.bf16.mxu1 %v549_v35 }
 0x114   :  { %574 = vmatpush1.bf16.msra.mxu1 %v551_v40 }
 0x115   :  { %567 = vmatprep.subr.bf16.mxu1 %v553_v41 }
 0x118   :  { %575 = vmatpush1.bf16.msra.mxu1 %v555_v44 }
 0x119   :  { %568 = vmatprep.subr.bf16.mxu1 %v557_v52 }
 0x11c   :  { %576 = vmatpush1.bf16.msra.mxu1 %v559_v53 }
 0x11f   :  { %338 = vmatmul.mubr.f32.vlgmr.msra.gmra.mrb[2].mxu1 %v123_v1 }
 0x1ce   :  { %v333_v7 = vpop.f32.mrb[4].mxu0 }
 0x1cf   :  { %v335_v8 = vpop.f32.mrb[5].mxu0 }
 0x1d2   :  { %v256_v10 = vpop.f32.mrb[0].mxu1 }
 0x1d3   :  { %v334_v11 = vadd.f32 %v333_v7, %v256_v10  ;;  %v258_v12 = vpop.f32.mrb[1].mxu1 }
 0x1d4   :  { %v336_v13 = vadd.f32 %v335_v8, %v258_v12 }
 0x1d6   :  { %v373_v14 = vsel %vm371_vm0, %v336_v13, %v334_v11 }
 0x1d7   :  { %582 = vrsqrt.f32 %v373_v14  ;;  %vm377_vm1 = vcmp.eq.f32.partialorder %v373_v14, inf  ;;  %v380_v17 = vand.u32 2147483648, %v373_v14  ;;  %vm379_vm2 = vcmp.eq.f32.partialorder %v373_v14, 0.0 }
 0x1d8   :  { %v389_v20 = vadd.f32 1.0, %v373_v14 }
 0x1e1   :  { %v583_v15 = vpop.eup %582 }
 0x1e2   :  { %v376_v16 = vmul.f32 %v583_v15, %v373_v14 }
 0x1e4   :  { %v378_v18 = vsel %vm377_vm1, %v373_v14, %v376_v16 }
 0x1e5   :  { %v381_v19 = vsel %vm379_vm2, %v380_v17, %v378_v18 }
 0x1e6   :  { %v391_v21 = vadd.f32 1e-08, %v381_v19 }
 0x1e8   :  { %v393_v22 = vmul.f32 %v391_v21, %v389_v20 }
 0x1ea   :  { %584 = vrcp.f32 %v393_v22 }
 0x1f2   :  { %v339_v25 = vpop.f32.mrb[2].mxu1 }
 0x1f3   :  { %v341_v26 = vpop.f32.mrb[3].mxu1 }
 0x1f4   :  { %v585_v27 = vpop.eup %584  ;;  %v374_v28 = vsel %vm372_vm3, %v341_v26, %v339_v25 }
 0x1f5   :  { %v397_v29 = vmul.f32 %v585_v27, %v373_v14  ;;  %586 = vrsqrt.f32 %v374_v28  ;;  %vm384_vm4 = vcmp.eq.f32.partialorder %v374_v28, inf  ;;  %v387_v33 = vand.u32 2147483648, %v374_v28 }
 0x1f6   :  { %vm386_vm5 = vcmp.eq.f32.partialorder %v374_v28, 0.0  ;;  %v390_v36 = vadd.f32 1.0, %v374_v28 }
 0x1f7   :  { %v399_v30 = vmul.f32 %v397_v29, %v103_v62 }
 0x1f9   :  { %401 = vst [vmem:[%s919_s4] sm:$0xff] %v399_v30 }
 0x1ff   :  { %v587_v31 = vpop.eup %586 }
 0x200   :  { %v383_v32 = vmul.f32 %v587_v31, %v374_v28 }
 0x202   :  { %v385_v34 = vsel %vm384_vm4, %v374_v28, %v383_v32 }
 0x203   :  { %v388_v35 = vsel %vm386_vm5, %v387_v33, %v385_v34 }
 0x204   :  { %v392_v37 = vadd.f32 1e-08, %v388_v35 }
 0x206   :  { %v394_v38 = vmul.f32 %v392_v37, %v390_v36 }
 0x208   :  { %588 = vrcp.f32 %v394_v38 }
 0x212   :  { %v589_v39 = vpop.eup %588 }
 0x213   :  { %v398_v40 = vmul.f32 %v589_v39, %v374_v28 }
 0x215   :  { %v400_v41 = vmul.f32 %v896_v61, %v398_v40 }
 0x217   :  { %402 = vst [vmem:[%s919_s4 + $0x8] sm:$0xff] %v400_v41 }

</bundles_post_ra>
